<compile_context>
chip_gen: v7x
topology: tpu7x:2x2x1
jax: 0.10.0
libtpu: 0.0.40
codegen_flags: <defaults>
</compile_context>

<pallas_src>
import functools

import jax
import jax.numpy as jnp
from jax import lax
from jax.experimental import pallas as pl
from jax.experimental.pallas import tpu as pltpu


# ---------------------------------------------------------------------------
# Kernels
# ---------------------------------------------------------------------------

def _cln_rowwise_kernel(x_ref, w_ref, b_ref, o_ref, *, eps, hidden):
    """One row per statistic: x_ref is (TR, H); H is the full hidden dim."""
    x = x_ref[...].astype(jnp.float32)
    a = jnp.abs(x)

    # Fused single-pass statistics (three independent lane reductions).
    s1 = jnp.sum(x, axis=1, keepdims=True)
    sa = jnp.sum(a, axis=1, keepdims=True)
    sa2 = jnp.sum(a * a, axis=1, keepdims=True)

    inv_h = 1.0 / hidden
    mean = s1 * inv_h
    var = jnp.maximum(sa2 - sa * sa * inv_h, 0.0) * (1.0 / (hidden - 1))

    y = (x - mean) * lax.rsqrt(var + eps)
    o_ref[...] = (y * w_ref[...] + b_ref[...]).astype(o_ref.dtype)


def _cln_folded_kernel(x_ref, m_ref, w_ref, b_ref, o_ref, *, eps, hidden):
    """Lane-dense path: g = L//hidden original rows are packed into each
    L(=128)-wide row.  Per-segment sums (sum over each original row, broadcast
    back to its lanes) are computed as a matmul with the 0/1 block matrix in
    m_ref, using an exact hi/lo bf16 split so precision matches f32 reductions.

    x_ref: (TR, L);  m_ref: (2L, L) bf16 = [M ; M] with M[i,j] = (i//H == j//H).
    """
    f32 = jnp.float32
    x = x_ref[...].astype(f32)                      # (TR, L)
    m = m_ref[...]                                  # (2L, L) bf16, exact 0/1

    # Exact split: x = x_hi + x_lo, both representable in bf16.
    x_hi = x.astype(jnp.bfloat16)
    x_lo = (x - x_hi.astype(f32)).astype(jnp.bfloat16)

    # |x| = |x_hi| + sign(x) * x_lo  (exact; both pieces bf16-representable).
    neg = x < 0.0
    a_hi = jnp.abs(x_hi)
    a_lo = jnp.where(neg, -x_lo, x_lo)

    # x^2 (== |x|^2) split.
    x2 = x * x
    x2_hi = x2.astype(jnp.bfloat16)
    x2_lo = (x2 - x2_hi.astype(f32)).astype(jnp.bfloat16)

    def seg_sum(hi, lo):
        # [hi | lo] @ [M ; M]  ==  (hi + lo) @ M, accumulated in f32 on the MXU.
        z = jnp.concatenate([hi, lo], axis=1)                    # (TR, 2L) bf16
        return jnp.dot(z, m, preferred_element_type=f32)         # (TR, L) f32

    s1 = seg_sum(x_hi, x_lo)      # per-row sum(x),   broadcast over that row's lanes
    sa = seg_sum(a_hi, a_lo)      # per-row sum(|x|)
    sa2 = seg_sum(x2_hi, x2_lo)   # per-row sum(|x|^2)

    inv_h = 1.0 / hidden
    mean = s1 * inv_h
    var = jnp.maximum(sa2 - sa * sa * inv_h, 0.0) * (1.0 / (hidden - 1))

    y = (x - mean) * lax.rsqrt(var + eps)
    o_ref[...] = (y * w_ref[...] + b_ref[...]).astype(o_ref.dtype)


# ---------------------------------------------------------------------------
# Wrapper
# ---------------------------------------------------------------------------

def _round_up(v, m):
    return ((v + m - 1) // m) * m


def _pick_row_tile(n_rows, lane, itemsize, target_bytes=2 * 1024 * 1024):
    """Row tile sized to ~target_bytes of input per block, multiple of 8."""
    tr = max(8, (target_bytes // max(1, lane * itemsize)) // 8 * 8)
    tr = min(tr, _round_up(n_rows, 8))
    # Keep several grid steps (pipelining + v7x megacore sharding) when the
    # problem is big enough to benefit.
    while tr > 8 and n_rows > 4 * 8 and pl.cdiv(n_rows, tr) < 4:
        tr = max(8, (tr // 2) // 8 * 8)
    return tr


def complex_layer_norm(x, weight, bias, eps=1e-5):
    """Pallas implementation of ComplexLayerNorm.forward.

    x: real float array of shape (..., H); weight, bias: (H,).
    """
    x_shape = x.shape
    hidden = x_shape[-1]
    assert hidden > 1, "ComplexLayerNorm needs num_channels > 1 (unbiased var)."
    assert not jnp.issubdtype(x.dtype, jnp.complexfloating), (
        "real floating inputs only")  # TODO(synk): complex inputs unsupported.
    assert weight.shape == (hidden,) and bias.shape == (hidden,)

    n_rows = x.size // hidden
    itemsize = jnp.dtype(x.dtype).itemsize

    # Lane folding: pack g consecutive rows into one lane-dense 128-wide row.
    g = 1
    if hidden < 128 and 128 % hidden == 0:
        g = 128 // hidden
        while g > 1 and n_rows % g != 0:
            g //= 2

    lane = g * hidden
    nf = n_rows // g
    x2 = x.reshape(nf, lane)                      # pure row-major reshape

    # Pre-tile affine params once in the wrapper (no per-step rebroadcast).
    w_full = jnp.tile(weight.astype(jnp.float32), g).reshape(1, lane)
    b_full = jnp.tile(bias.astype(jnp.float32), g).reshape(1, lane)

    tr = _pick_row_tile(nf, lane, itemsize)
    grid = (pl.cdiv(nf, tr),)   # tail block may be partial; rows are independent
                                # and out-of-range writes are clipped by out_shape.

    cost = pl.CostEstimate(
        flops=int(10 * x.size + (6 * x.size * lane if g > 1 else 0)),
        transcendentals=int(n_rows),
        bytes_accessed=int(2 * x.size * itemsize),
    )
    cparams = pltpu.CompilerParams(
        dimension_semantics=("parallel",),
        vmem_limit_bytes=48 * 1024 * 1024,   # above v5e/v6e defaults, < v7x physical
    )

    if g > 1:
        # Block matrix M[i, j] = 1 if lanes i, j belong to the same original row.
        seg = jnp.arange(lane) // hidden
        m0 = (seg[:, None] == seg[None, :])
        m2 = jnp.concatenate([m0, m0], axis=0).astype(jnp.bfloat16)  # (2L, L)

        kernel = functools.partial(_cln_folded_kernel, eps=float(eps), hidden=hidden)
        out2 = pl.pallas_call(
            kernel,
            out_shape=jax.ShapeDtypeStruct((nf, lane), x.dtype),
            grid_spec=pltpu.PrefetchScalarGridSpec(
                num_scalar_prefetch=0,
                grid=grid,
                in_specs=[
                    pl.BlockSpec((tr, lane), lambda i: (i, 0)),
                    pl.BlockSpec((2 * lane, lane), lambda i: (0, 0)),
                    pl.BlockSpec((1, lane), lambda i: (0, 0)),
                    pl.BlockSpec((1, lane), lambda i: (0, 0)),
                ],
                out_specs=pl.BlockSpec((tr, lane), lambda i: (i, 0)),
            ),
            compiler_params=cparams,
            cost_estimate=cost,
        )(x2, m2, w_full, b_full)
    else:
        kernel = functools.partial(_cln_rowwise_kernel, eps=float(eps), hidden=hidden)
        out2 = pl.pallas_call(
            kernel,
            out_shape=jax.ShapeDtypeStruct((nf, lane), x.dtype),
            grid_spec=pltpu.PrefetchScalarGridSpec(
                num_scalar_prefetch=0,
                grid=grid,
                in_specs=[
                    pl.BlockSpec((tr, lane), lambda i: (i, 0)),
                    pl.BlockSpec((1, lane), lambda i: (0, 0)),
                    pl.BlockSpec((1, lane), lambda i: (0, 0)),
                ],
                out_specs=pl.BlockSpec((tr, lane), lambda i: (i, 0)),
            ),
            compiler_params=cparams,
            cost_estimate=cost,
        )(x2, w_full, b_full)

    return out2.reshape(x_shape)


# ---------------------------------------------------------------------------
# Reference + self-test
# ---------------------------------------------------------------------------

def _reference(x, weight, bias, eps=1e-5):
    shp = x.shape
    h = shp[-1]
    x2 = x.reshape(-1, h).astype(jnp.float32)
    mean = jnp.mean(x2, axis=1, keepdims=True)
    a = jnp.abs(x2)
    var = jnp.sum((a - jnp.mean(a, axis=1, keepdims=True)) ** 2,
                  axis=1, keepdims=True) / (h - 1)
    y = (x2 - mean) / jnp.sqrt(var + eps)
    y = y * weight.reshape(1, h).astype(jnp.float32) \
          + bias.reshape(1, h).astype(jnp.float32)
    return y.reshape(shp).astype(x.dtype)


if __name__ == "__main__":
    key = jax.random.PRNGKey(0)
    num_channels = 32
    x = jax.random.normal(key, (2, 4, 16, num_channels), dtype=jnp.float32)

    # Module default init: weight = ones, bias = zeros.
    weight = jnp.ones((num_channels,), dtype=jnp.float32)
    bias = jnp.zeros((num_channels,), dtype=jnp.float32)

    out = jax.block_until_ready(complex_layer_norm(x, weight, bias, eps=1e-5))
    ref = _reference(x, weight, bias, eps=1e-5)
    assert out.shape == x.shape and out.dtype == x.dtype
    assert jnp.allclose(out, ref, atol=1e-4, rtol=1e-4), "mismatch (folded path)"

    # Non-trivial affine params (exercises lane-folded weight/bias tiling).
    kw, kb, kx = jax.random.split(jax.random.PRNGKey(1), 3)
    w2 = jax.random.normal(kw, (num_channels,), dtype=jnp.float32)
    b2 = jax.random.normal(kb, (num_channels,), dtype=jnp.float32)
    out2 = jax.block_until_ready(complex_layer_norm(x, w2, b2))
    assert jnp.allclose(out2, _reference(x, w2, b2), atol=1e-4, rtol=1e-4), \
        "mismatch (folded path, affine)"

    # Row-wise (H >= 128) path with a partial tail block (N not a tile multiple).
    h3 = 256
    x3 = jax.random.normal(kx, (5, 104, h3), dtype=jnp.float32)
    w3 = jax.random.normal(kw, (h3,), dtype=jnp.float32)
    b3 = jax.random.normal(kb, (h3,), dtype=jnp.float32)
    out3 = jax.block_until_ready(complex_layer_norm(x3, w3, b3))
    assert jnp.allclose(out3, _reference(x3, w3, b3), atol=1e-4, rtol=1e-4), \
        "mismatch (row-wise path)"

    print("KERNEL_OK")
</pallas_src>

<mosaic_0001>
module attributes {stable_mosaic.version = 11 : i64} {
  func.func @_cln_folded_kernel(%arg0: i32, %arg1: memref<32x128xf32, #tpu.memory_space<vmem>>, %arg2: memref<256x128xbf16, #tpu.memory_space<vmem>>, %arg3: memref<1x128xf32, #tpu.memory_space<vmem>>, %arg4: memref<1x128xf32, #tpu.memory_space<vmem>>, %arg5: memref<32x128xf32, #tpu.memory_space<vmem>>) attributes {dimension_semantics = [#tpu.dimension_semantics<parallel>], iteration_bounds = array<i64: 1>, scalar_prefetch = 0 : i64, scratch_operands = 0 : i64, tpu.core_type = #tpu.core_type<tc>, window_params = [{transform_indices = @transform_0, window_bounds = array<i64: 32, 128>}, {pipeline_mode = #tpu.pipeline_mode<synchronous>, transform_indices = @transform_1, window_bounds = array<i64: 256, 128>}, {pipeline_mode = #tpu.pipeline_mode<synchronous>, transform_indices = @transform_2, window_bounds = array<i64: 1, 128>}, {pipeline_mode = #tpu.pipeline_mode<synchronous>, transform_indices = @transform_3, window_bounds = array<i64: 1, 128>}, {transform_indices = @transform_4, window_bounds = array<i64: 32, 128>}]} {
    %c0 = arith.constant 0 : index
    %c0_0 = arith.constant 0 : index
    %0 = vector.load %arg1[%c0, %c0_0] : memref<32x128xf32, #tpu.memory_space<vmem>>, vector<32x128xf32>
    %c0_1 = arith.constant 0 : index
    %c0_2 = arith.constant 0 : index
    %1 = vector.load %arg2[%c0_1, %c0_2] : memref<256x128xbf16, #tpu.memory_space<vmem>>, vector<256x128xbf16>
    %2 = arith.truncf %0 : vector<32x128xf32> to vector<32x128xbf16>
    %3 = arith.extf %2 : vector<32x128xbf16> to vector<32x128xf32>
    %4 = arith.subf %0, %3 : vector<32x128xf32>
    %5 = arith.truncf %4 : vector<32x128xf32> to vector<32x128xbf16>
    %cst = arith.constant 0.000000e+00 : f32
    %6 = vector.broadcast %cst : f32 to vector<32x128xf32>
    %7 = arith.cmpf olt, %0, %6 : vector<32x128xf32>
    %8 = math.absf %2 : vector<32x128xbf16>
    %cst_3 = arith.constant 0.000000e+00 : bf16
    %9 = vector.broadcast %cst_3 : bf16 to vector<32x128xbf16>
    %10 = arith.subf %9, %5 : vector<32x128xbf16>
    %11 = arith.select %7, %10, %5 : vector<32x128xi1>, vector<32x128xbf16>
    %12 = arith.mulf %0, %0 : vector<32x128xf32>
    %13 = arith.truncf %12 : vector<32x128xf32> to vector<32x128xbf16>
    %14 = arith.extf %13 : vector<32x128xbf16> to vector<32x128xf32>
    %15 = arith.subf %12, %14 : vector<32x128xf32>
    %16 = arith.truncf %15 : vector<32x128xf32> to vector<32x128xbf16>
    %17 = tpu.concatenate %2, %5 in 1 : vector<32x128xbf16>, vector<32x128xbf16> -> vector<32x256xbf16>
    %cst_4 = arith.constant dense<0.000000e+00> : vector<32x128xf32>
    %18 = tpu.matmul %17, %1, %cst_4 {dimension_numbers = #tpu.dot_dimension_numbers<[1], [0], [0], [1], [0, 0, 1, 1], [], []>} : vector<32x256xbf16>, vector<256x128xbf16>, vector<32x128xf32> -> vector<32x128xf32>
    %19 = tpu.concatenate %8, %11 in 1 : vector<32x128xbf16>, vector<32x128xbf16> -> vector<32x256xbf16>
    %cst_5 = arith.constant dense<0.000000e+00> : vector<32x128xf32>
    %20 = tpu.matmul %19, %1, %cst_5 {dimension_numbers = #tpu.dot_dimension_numbers<[1], [0], [0], [1], [0, 0, 1, 1], [], []>} : vector<32x256xbf16>, vector<256x128xbf16>, vector<32x128xf32> -> vector<32x128xf32>
    %21 = tpu.concatenate %13, %16 in 1 : vector<32x128xbf16>, vector<32x128xbf16> -> vector<32x256xbf16>
    %cst_6 = arith.constant dense<0.000000e+00> : vector<32x128xf32>
    %22 = tpu.matmul %21, %1, %cst_6 {dimension_numbers = #tpu.dot_dimension_numbers<[1], [0], [0], [1], [0, 0, 1, 1], [], []>} : vector<32x256xbf16>, vector<256x128xbf16>, vector<32x128xf32> -> vector<32x128xf32>
    %cst_7 = arith.constant 3.125000e-02 : f32
    %23 = vector.broadcast %cst_7 : f32 to vector<32x128xf32>
    %24 = arith.mulf %18, %23 : vector<32x128xf32>
    %25 = arith.mulf %20, %20 : vector<32x128xf32>
    %cst_8 = arith.constant 3.125000e-02 : f32
    %26 = vector.broadcast %cst_8 : f32 to vector<32x128xf32>
    %27 = arith.mulf %25, %26 : vector<32x128xf32>
    %28 = arith.subf %22, %27 : vector<32x128xf32>
    %cst_9 = arith.constant 0.000000e+00 : f32
    %29 = vector.broadcast %cst_9 : f32 to vector<32x128xf32>
    %30 = arith.maximumf %28, %29 : vector<32x128xf32>
    %cst_10 = arith.constant 0.0322580636 : f32
    %31 = vector.broadcast %cst_10 : f32 to vector<32x128xf32>
    %32 = arith.mulf %30, %31 : vector<32x128xf32>
    %33 = arith.subf %0, %24 : vector<32x128xf32>
    %cst_11 = arith.constant 9.99999974E-6 : f32
    %34 = vector.broadcast %cst_11 : f32 to vector<32x128xf32>
    %35 = arith.addf %32, %34 : vector<32x128xf32>
    %36 = math.rsqrt %35 : vector<32x128xf32>
    %37 = arith.mulf %33, %36 : vector<32x128xf32>
    %c0_12 = arith.constant 0 : index
    %c0_13 = arith.constant 0 : index
    %38 = vector.load %arg3[%c0_12, %c0_13] : memref<1x128xf32, #tpu.memory_space<vmem>>, vector<1x128xf32>
    %39 = vector.broadcast %38 : vector<1x128xf32> to vector<32x128xf32>
    %40 = arith.mulf %37, %39 : vector<32x128xf32>
    %c0_14 = arith.constant 0 : index
    %c0_15 = arith.constant 0 : index
    %41 = vector.load %arg4[%c0_14, %c0_15] : memref<1x128xf32, #tpu.memory_space<vmem>>, vector<1x128xf32>
    %42 = vector.broadcast %41 : vector<1x128xf32> to vector<32x128xf32>
    %43 = arith.addf %40, %42 : vector<32x128xf32>
    %c0_16 = arith.constant 0 : index
    %c0_17 = arith.constant 0 : index
    %44 = vector.load %arg5[%c0_16, %c0_17] : memref<32x128xf32, #tpu.memory_space<vmem>>, vector<32x128xf32>
    tpu.vector_store %arg5[%c0_16, %c0_17], %43 {strides = array<i32>} : memref<32x128xf32, #tpu.memory_space<vmem>>, vector<32x128xf32>,
    return
  }
  func.func @transform_0(%arg0: i32) -> (i32, i32) {
    %c0_i32 = arith.constant 0 : i32
    %c0_i32_0 = arith.constant 0 : i32
    return %arg0, %c0_i32 : i32, i32
  }
  func.func @transform_1(%arg0: i32) -> (i32, i32) {
    %c0_i32 = arith.constant 0 : i32
    %c0_i32_0 = arith.constant 0 : i32
    %c0_i32_1 = arith.constant 0 : i32
    return %c0_i32, %c0_i32_0 : i32, i32
  }
  func.func @transform_2(%arg0: i32) -> (i32, i32) {
    %c0_i32 = arith.constant 0 : i32
    %c0_i32_0 = arith.constant 0 : i32
    %c0_i32_1 = arith.constant 0 : i32
    return %c0_i32, %c0_i32_0 : i32, i32
  }
  func.func @transform_3(%arg0: i32) -> (i32, i32) {
    %c0_i32 = arith.constant 0 : i32
    %c0_i32_0 = arith.constant 0 : i32
    %c0_i32_1 = arith.constant 0 : i32
    return %c0_i32, %c0_i32_0 : i32, i32
  }
  func.func @transform_4(%arg0: i32) -> (i32, i32) {
    %c0_i32 = arith.constant 0 : i32
    %c0_i32_0 = arith.constant 0 : i32
    return %arg0, %c0_i32 : i32, i32
  }
}

</mosaic_0001>

<bundles_post_ra>
// kernel: tpu_custom_call.1
= control target key start
LH: loop header
LB: loop body
LE: loop exit
PB: predicated region body
PF: predicated region fallthrough
CT: control target
= control target key end

     0   :  { %9 = vsyncpa [#allocation3], 0  ;;  %s885_s0 = inlined_call_operand.hbm [shape: f32[32,128], index: 0, kind: input, shape index: {}]   ;;  %s886_s1 = inlined_call_operand.hbm [shape: bf16[256,128], index: 1, kind: input, shape index: {}]   ;;  %s887_s2 = inlined_call_operand.vmem [shape: f32[1,128], index: 2, kind: input, shape index: {}]   ;;  %s888_s3 = inlined_call_operand.vmem [shape: f32[1,128], index: 3, kind: input, shape index: {}]   ;;  %s889_s4 = inlined_call_operand.hbm [shape: f32[32,128], index: 4, kind: output, shape index: {}]  }
   0x1   :  { %10 = vsyncpa [#allocation6], 0 }
   0x2   :  { %11 = vsyncpa [#allocation4], 0  ;;  %s671_s15 = smov [#allocation2]   ;;  %s599_s19 = scalar_lea.hbm %s885_s0, 512 }
   0x3   :  { %s17_s16 = sshll.u32 %s671_s15, 4  ;;  %p600_p0 = scmp.ne.s32.totalorder %s885_s0, %s599_s19  ;;  %s18_s16 = int_to_ptr.vmem [resolvable:$true] %s17_s16 }
   0x4   :  { %p603_p1 = scmp.lt.u32.totalorder %s599_s19, %s885_s0 }
   0x6   :  { %p605_p2 = pnand %p603_p1, %p600_p0 }
   0x8   :  { %608 = shalt.err (!%p605_p2)
}
   0x9   :  { %s609_s24 = scalar_lea.vmem %s18_s16, 512  ;;  %p614_p4 = scmp.lt.s32.totalorder %s18_s16, %s18_s16 }
   0xa   :  { %p610_p3 = scmp.ne.s32.totalorder %s18_s16, %s609_s24  ;;  %p615_p5 = scmp.lt.s32.totalorder %s609_s24, %s609_s24 }
   0xc   :  { %p616_p6 = por %p615_p5, %p614_p4 }
   0xe   :  { %p617_p7 = pnand %p616_p6, %p610_p3 }
  0x10   :  { %620 = shalt.err (!%p617_p7)
}
  0x11   :  { %s672_s25 = smov 128   ;;  %s673_s26 = smov 8  }
  0x12   :  { %23 = dma.hbm_to_vmem [thread:$0]  %s885_s0, 512, %s18_s16, [#allocation3], %s672_s25, %s672_s25, %s673_s26  }
  0x13   :  { %s674_s29 = smov [#allocation5]   ;;  %s621_s7 = scalar_lea.hbm %s886_s1, 2048 }
  0x14   :  { %s29_s30 = sshll.u32 %s674_s29, 4  ;;  %p622_p8 = scmp.ne.s32.totalorder %s886_s1, %s621_s7  ;;  %s30_s30 = int_to_ptr.vmem [resolvable:$true] %s29_s30 }
  0x15   :  { %p625_p9 = scmp.lt.u32.totalorder %s621_s7, %s886_s1 }
  0x17   :  { %p627_p10 = pnand %p625_p9, %p622_p8 }
  0x19   :  { %630 = shalt.err (!%p627_p10)
}
  0x1a   :  { %s631_s12 = scalar_lea.vmem %s30_s30, 2048  ;;  %p636_p12 = scmp.lt.s32.totalorder %s30_s30, %s30_s30 }
  0x1b   :  { %p632_p11 = scmp.ne.s32.totalorder %s30_s30, %s631_s12  ;;  %p637_p13 = scmp.lt.s32.totalorder %s631_s12, %s631_s12 }
  0x1d   :  { %p638_p0 = por %p637_p13, %p636_p12 }
  0x1f   :  { %p639_p1 = pnand %p638_p0, %p632_p11 }
  0x21   :  { %642 = shalt.err (!%p639_p1)
}
  0x22   :  { %s675_s0 = smov 64   ;;  %s676_s13 = smov 4  }
  0x23   :  { %35 = dma.hbm_to_vmem [thread:$0]  %s886_s1, 2048, %s30_s30, [#allocation6], %s675_s0, %s675_s0, %s676_s13  }
  0x24   :  { %665 = dma.done.wait [#allocation3], 512  }
  0x25   :  { %666 = vsyncadd [#allocation3], 4294966784 }
  0x26   :  { %667 = dma.done.wait [#allocation6], 2048  }
  0x27   :  { %668 = vsyncadd [#allocation6], 4294965248  ;;  %v730_v0 = vld [vmem:[#allocation5 + $0x40] sm:$0xff]   ;;  %v736_v2 = vld [vmem:[#allocation5 + $0x48] sm:$0xff]  }
  0x28   :  { %v732_v1 = vld [vmem:[#allocation5] sm:$0xff]   ;;  %468 = vmatprep.subr.bf16.mxu0 %v730_v0  ;;  %496 = vmatprep.subr.bf16.mxu1 %v730_v0  ;;  %v740_v3 = vld [vmem:[#allocation5 + $0x8] sm:$0xff]   ;;  %v744_v4 = vld [vmem:[#allocation5 + $0x50] sm:$0xff]  }
  0x29   :  { %469 = vmatpush3.bf16.msra.mxu0 %v732_v1  ;;  %497 = vmatpush3.bf16.msra.mxu1 %v732_v1  ;;  %v748_v5 = vld [vmem:[#allocation5 + $0x10] sm:$0xff]   ;;  %v752_v6 = vld [vmem:[#allocation5 + $0x58] sm:$0xff]   ;;  %v760_v8 = vld [vmem:[#allocation5 + $0x60] sm:$0xff]  }
  0x2a   :  { %470 = vmatprep.subr.bf16.mxu0 %v736_v2  ;;  %498 = vmatprep.subr.bf16.mxu1 %v736_v2  ;;  %v756_v7 = vld [vmem:[#allocation5 + $0x18] sm:$0xff]   ;;  %v762_v9 = vld [vmem:[#allocation5 + $0x20] sm:$0xff]   ;;  %v766_v10 = vld [vmem:[#allocation5 + $0x68] sm:$0xff]  }
  0x2b   :  { %v770_v11 = vld [vmem:[#allocation2] sm:$0xff]  ;;  %v772_v12 = vld [vmem:[#allocation2 + $0x8] sm:$0xff]  ;;  %v774_v13 = vld [vmem:[#allocation2 + $0x10] sm:$0xff] }
  0x2c   :  { %v83_v14 = vpack.c.bf16 %v772_v12, %v770_v11  ;;  %v778_v15 = vld [vmem:[#allocation2 + $0x18] sm:$0xff]  ;;  %v786_v17 = vld [vmem:[#allocation5 + $0x28] sm:$0xff]   ;;  %v790_v20 = vld [vmem:[#allocation5 + $0x70] sm:$0xff]   ;;  %vm95_vm0 = vcmp.lt.f32.partialorder %v770_v11, 0.0  ;;  %vm96_vm1 = vcmp.lt.f32.partialorder %v772_v12, 0.0  ;;  %v107_v30 = vmul.f32 %v770_v11, %v770_v11 }
  0x2d   :  { %471 = vmatpush3.bf16.msra.mxu0 %v740_v3  ;;  %499 = vmatpush3.bf16.msra.mxu1 %v740_v3  ;;  %v782_v16 = vpack.c.bf16 %v778_v15, %v774_v13  ;;  %v802_v27 = vld [vmem:[#allocation5 + $0x30] sm:$0xff]   ;;  %v806_v29 = vld [vmem:[#allocation5 + $0x78] sm:$0xff]   ;;  %vm103_vm2 = vmpackc.low %vm96_vm1, %vm95_vm0  ;;  %v108_v31 = vmul.f32 %v772_v12, %v772_v12  ;;  %v109_v33 = vmul.f32 %v774_v13, %v774_v13  ;;  %vm97_vm3 = vcmp.lt.f32.partialorder %v774_v13, 0.0 }
  0x2e   :  { %472 = vmatprep.subr.bf16.mxu0 %v744_v4  ;;  %500 = vmatprep.subr.bf16.mxu1 %v744_v4  ;;  %v85_v18 = vunpack.c.l.bf16 %v83_v14  ;;  %v86_v19 = vunpack.c.h.bf16 %v83_v14  ;;  %v110_v34 = vmul.f32 %v778_v15, %v778_v15  ;;  %v818_v36 = vld [vmem:[#allocation5 + $0x38] sm:$0xff]   ;;  %vm98_vm4 = vcmp.lt.f32.partialorder %v778_v15, 0.0 }
  0x2f   :  { %v87_v21 = vunpack.c.l.bf16 %v782_v16  ;;  %v88_v22 = vunpack.c.h.bf16 %v782_v16  ;;  %v111_v38 = vpack.c.bf16 %v108_v31, %v107_v30  ;;  %v99_v40 = vand.u32 2147450879, %v83_v14  ;;  %vm104_vm5 = vmpackc.low %vm98_vm4, %vm97_vm3 }
  0x30   :  { %v89_v23 = vsub.f32 %v770_v11, %v85_v18  ;;  %v90_v24 = vsub.f32 %v772_v12, %v86_v19  ;;  %v112_v39 = vpack.c.bf16 %v110_v34, %v109_v33  ;;  %v100_v51 = vand.u32 2147450879, %v782_v16 }
  0x31   :  { %473 = vmatpush3.bf16.msra.mxu0 %v748_v5  ;;  %501 = vmatpush3.bf16.msra.mxu1 %v748_v5  ;;  %v91_v25 = vsub.f32 %v774_v13, %v87_v21  ;;  %v92_v26 = vsub.f32 %v778_v15, %v88_v22  ;;  %v113_v42 = vunpack.c.l.bf16 %v111_v38  ;;  %v114_v43 = vunpack.c.h.bf16 %v111_v38 }
  0x32   :  { %474 = vmatprep.subr.bf16.mxu0 %v752_v6  ;;  %502 = vmatprep.subr.bf16.mxu1 %v752_v6  ;;  %v93_v28 = vpack.c.bf16 %v90_v24, %v89_v23  ;;  %v115_v44 = vunpack.c.l.bf16 %v112_v39  ;;  %v116_v45 = vunpack.c.h.bf16 %v112_v39 }
  0x33   :  { %v94_v35 = vpack.c.bf16 %v92_v26, %v91_v25  ;;  %v117_v47 = vsub.f32 %v107_v30, %v113_v42  ;;  %v118_v48 = vsub.f32 %v108_v31, %v114_v43 }
  0x34   :  { %251 = vmatprep.mubr.bf16.mxu0 %v93_v28  ;;  %v101_v32 = vsub.bf16 0, %v93_v28  ;;  %v119_v49 = vsub.f32 %v109_v33, %v115_v44  ;;  %v120_v50 = vsub.f32 %v110_v34, %v116_v45 }
  0x35   :  { %475 = vmatpush3.bf16.msra.mxu0 %v756_v7  ;;  %503 = vmatpush3.bf16.msra.mxu1 %v756_v7  ;;  %v102_v41 = vsub.bf16 0, %v94_v35  ;;  %v121_v52 = vpack.c.bf16 %v118_v48, %v117_v47 }
  0x36   :  { %476 = vmatprep.subr.bf16.mxu0 %v760_v8  ;;  %504 = vmatprep.subr.bf16.mxu1 %v760_v8  ;;  %v105_v37 = vsel %vm103_vm2, %v101_v32, %v93_v28  ;;  %v122_v53 = vpack.c.bf16 %v120_v50, %v119_v49 }
  0x37   :  { %300 = vmatprep.mubr.bf16.mxu1 %v105_v37  ;;  %v106_v46 = vsel %vm104_vm5, %v102_v41, %v94_v35 }
  0x39   :  { %477 = vmatpush3.bf16.msra.mxu0 %v762_v9  ;;  %505 = vmatpush3.bf16.msra.mxu1 %v762_v9 }
  0x3a   :  { %478 = vmatprep.subr.bf16.mxu0 %v766_v10  ;;  %506 = vmatprep.subr.bf16.mxu1 %v766_v10 }
  0x3d   :  { %479 = vmatpush3.bf16.msra.mxu0 %v786_v17  ;;  %507 = vmatpush3.bf16.msra.mxu1 %v786_v17 }
  0x3e   :  { %480 = vmatprep.subr.bf16.mxu0 %v790_v20  ;;  %508 = vmatprep.subr.bf16.mxu1 %v790_v20 }
  0x41   :  { %481 = vmatpush3.bf16.msra.mxu0 %v802_v27  ;;  %509 = vmatpush3.bf16.msra.mxu1 %v802_v27 }
  0x42   :  { %482 = vmatprep.subr.bf16.mxu0 %v806_v29  ;;  %510 = vmatprep.subr.bf16.mxu1 %v806_v29 }
  0x45   :  { %483 = vmatpush3.bf16.msra.mxu0 %v818_v36  ;;  %511 = vmatpush3.bf16.msra.mxu1 %v818_v36 }
  0x46   :  { %524 = vmatprep.subr.bf16.mxu0 %v730_v0  ;;  %552 = vmatprep.subr.bf16.mxu1 %v730_v0 }
  0x48   :  { %252 = vmatmul.mubr.bf16.vlgmr.msra.gmra.mrb[0].mxu0 %v83_v14  ;;  %301 = vmatmul.mubr.bf16.vlgmr.msra.gmra.mrb[0].mxu1 %v99_v40 }
  0x49   :  { %525 = vmatpush3.bf16.msra.mxu0 %v732_v1  ;;  %560 = vmatpush3.bf16.msra.mxu1 %v732_v1 }
  0x4a   :  { %526 = vmatprep.subr.bf16.mxu0 %v736_v2  ;;  %553 = vmatprep.subr.bf16.mxu1 %v736_v2 }
  0x4b   :  { %259 = vmatprep.mubr.bf16.mxu0 %v94_v35  ;;  %308 = vmatprep.mubr.bf16.mxu1 %v106_v46 }
  0x4d   :  { %527 = vmatpush3.bf16.msra.mxu0 %v740_v3  ;;  %561 = vmatpush3.bf16.msra.mxu1 %v740_v3 }
  0x4e   :  { %528 = vmatprep.subr.bf16.mxu0 %v744_v4  ;;  %554 = vmatprep.subr.bf16.mxu1 %v744_v4 }
  0x50   :  { %260 = vmatmul.mubr.bf16.gmra.mrb[4].mxu0 %v782_v16  ;;  %309 = vmatmul.mubr.bf16.gmra.mrb[4].mxu1 %v100_v51 }
  0x51   :  { %529 = vmatpush3.bf16.msra.mxu0 %v748_v5  ;;  %562 = vmatpush3.bf16.msra.mxu1 %v748_v5 }
  0x52   :  { %530 = vmatprep.subr.bf16.mxu0 %v752_v6  ;;  %555 = vmatprep.subr.bf16.mxu1 %v752_v6 }
  0x53   :  { %349 = vmatprep.mubr.bf16.mxu0 %v121_v52  ;;  %357 = vmatprep.mubr.bf16.mxu1 %v122_v53 }
  0x55   :  { %531 = vmatpush3.bf16.msra.mxu0 %v756_v7  ;;  %563 = vmatpush3.bf16.msra.mxu1 %v756_v7 }
  0x56   :  { %532 = vmatprep.subr.bf16.mxu0 %v760_v8  ;;  %556 = vmatprep.subr.bf16.mxu1 %v760_v8 }
  0x59   :  { %533 = vmatpush3.bf16.msra.mxu0 %v762_v9  ;;  %564 = vmatpush3.bf16.msra.mxu1 %v762_v9 }
  0x5a   :  { %534 = vmatprep.subr.bf16.mxu0 %v766_v10  ;;  %557 = vmatprep.subr.bf16.mxu1 %v766_v10 }
  0x5d   :  { %535 = vmatpush3.bf16.msra.mxu0 %v786_v17  ;;  %565 = vmatpush3.bf16.msra.mxu1 %v786_v17 }
  0x5e   :  { %536 = vmatprep.subr.bf16.mxu0 %v790_v20  ;;  %558 = vmatprep.subr.bf16.mxu1 %v790_v20 }
  0x61   :  { %537 = vmatpush3.bf16.msra.mxu0 %v802_v27  ;;  %566 = vmatpush3.bf16.msra.mxu1 %v802_v27 }
  0x62   :  { %538 = vmatprep.subr.bf16.mxu0 %v806_v29  ;;  %559 = vmatprep.subr.bf16.mxu1 %v806_v29 }
  0x65   :  { %539 = vmatpush3.bf16.msra.mxu0 %v818_v36  ;;  %567 = vmatpush3.bf16.msra.mxu1 %v818_v36 }
  0x68   :  { %350 = vmatmul.mubr.bf16.vlgmr.msra.gmra.mrb[8].mxu0 %v111_v38  ;;  %358 = vmatmul.mubr.bf16.vlgmr.msra.gmra.mrb[8].mxu1 %v112_v39 }
 0x11b   :  { %v484_v54 = vpop.f32.mrb[0].mxu0  ;;  %v512_v55 = vpop.f32.mrb[0].mxu1 }
 0x11c   :  { %v485_v56 = vpop.f32.mrb[1].mxu0  ;;  %v513_v57 = vpop.f32.mrb[1].mxu1 }
 0x11d   :  { %v486_v58 = vadd.f32 %v485_v56, %v484_v54  ;;  %v514_v59 = vadd.f32 %v513_v57, %v512_v55  ;;  %v487_v60 = vpop.f32.mrb[2].mxu0  ;;  %v515_v61 = vpop.f32.mrb[2].mxu1 }
 0x11e   :  { %v488_v62 = vpop.f32.mrb[3].mxu0  ;;  %v516_v63 = vpop.f32.mrb[3].mxu1 }
 0x11f   :  { %v489_v0 = vadd.f32 %v488_v62, %v487_v60  ;;  %v517_v1 = vadd.f32 %v516_v63, %v515_v61  ;;  %v370_v18 = vmul.f32 %v514_v59, %v514_v59  ;;  %v366_v54 = vmul.f32 0.03125, %v486_v58  ;;  %v466_v62 = vld [vmem:[%s887_s2] ss:$0 sm:$0xff]  ;;  %s677_s2 = smov [#allocation7]  }
 0x120   :  { %s437_s19 = sshll.u32 %s677_s2, 4  ;;  %s438_s19 = int_to_ptr.vmem [resolvable:$true] %s437_s19 }
 0x121   :  { %v371_v20 = vmul.f32 %v517_v1, %v517_v1  ;;  %v374_v26 = vmul.f32 0.03125, %v370_v18  ;;  %v367_v56 = vmul.f32 0.03125, %v489_v0  ;;  %v390_v59 = vsub.f32 %v770_v11, %v366_v54  ;;  %v467_v0 = vld [vmem:[%s888_s3] ss:$0 sm:$0xff]  ;;  %s643_s20 = scalar_lea.vmem %s438_s19, 512  ;;  %p648_p3 = scmp.lt.s32.totalorder %s438_s19, %s438_s19 }
 0x122   :  { %p644_p2 = scmp.ne.s32.totalorder %s438_s19, %s643_s20  ;;  %p649_p4 = scmp.lt.s32.totalorder %s643_s20, %s643_s20 }
 0x123   :  { %v490_v2 = vpop.f32.mrb[4].mxu0  ;;  %v518_v3 = vpop.f32.mrb[4].mxu1  ;;  %v375_v32 = vmul.f32 0.03125, %v371_v20  ;;  %v391_v1 = vsub.f32 %v772_v12, %v367_v56 }
 0x124   :  { %v491_v4 = vpop.f32.mrb[5].mxu0  ;;  %v519_v5 = vpop.f32.mrb[5].mxu1  ;;  %p650_p5 = por %p649_p4, %p648_p3 }
 0x125   :  { %v492_v6 = vadd.f32 %v491_v4, %v490_v2  ;;  %v520_v7 = vadd.f32 %v519_v5, %v518_v3  ;;  %v493_v8 = vpop.f32.mrb[6].mxu0  ;;  %v521_v9 = vpop.f32.mrb[6].mxu1 }
 0x126   :  { %v494_v10 = vpop.f32.mrb[7].mxu0  ;;  %v522_v14 = vpop.f32.mrb[7].mxu1  ;;  %p651_p6 = pnand %p650_p5, %p644_p2 }
 0x127   :  { %v495_v16 = vadd.f32 %v494_v10, %v493_v8  ;;  %v523_v17 = vadd.f32 %v522_v14, %v521_v9  ;;  %v372_v19 = vmul.f32 %v520_v7, %v520_v7  ;;  %v368_v55 = vmul.f32 0.03125, %v492_v6 }
 0x129   :  { %v373_v21 = vmul.f32 %v523_v17, %v523_v17  ;;  %v376_v27 = vmul.f32 0.03125, %v372_v19  ;;  %v369_v57 = vmul.f32 0.03125, %v495_v16  ;;  %v392_v61 = vsub.f32 %v774_v13, %v368_v55 }
 0x12b   :  { %v377_v33 = vmul.f32 0.03125, %v373_v21  ;;  %v393_v4 = vsub.f32 %v778_v15, %v369_v57 }
 0x13b   :  { %v540_v22 = vpop.f32.mrb[8].mxu0  ;;  %v546_v23 = vpop.f32.mrb[8].mxu1 }
 0x13c   :  { %v541_v24 = vpop.f32.mrb[9].mxu0  ;;  %v547_v25 = vpop.f32.mrb[9].mxu1 }
 0x13d   :  { %v542_v28 = vadd.f32 %v541_v24, %v540_v22  ;;  %v548_v29 = vadd.f32 %v547_v25, %v546_v23  ;;  %v543_v30 = vpop.f32.mrb[10].mxu0  ;;  %v549_v31 = vpop.f32.mrb[10].mxu1 }
 0x13e   :  { %v544_v34 = vpop.f32.mrb[11].mxu0  ;;  %v550_v35 = vpop.f32.mrb[11].mxu1 }
 0x13f   :  { %v378_v36 = vsub.f32 %v542_v28, %v374_v26  ;;  %v380_v37 = vsub.f32 %v548_v29, %v376_v27  ;;  %v545_v38 = vadd.f32 %v544_v34, %v543_v30  ;;  %v551_v39 = vadd.f32 %v550_v35, %v549_v31 }
 0x141   :  { %v382_v40 = vmax.f32 %v378_v36, 0.0  ;;  %v384_v41 = vmax.f32 %v380_v37, 0.0  ;;  %v379_v42 = vsub.f32 %v545_v38, %v375_v32  ;;  %v381_v43 = vsub.f32 %v551_v39, %v377_v33 }
 0x143   :  { %v386_v44 = vmul.f32 0.032258064, %v382_v40  ;;  %v388_v45 = vmul.f32 0.032258064, %v384_v41  ;;  %v383_v46 = vmax.f32 %v379_v42, 0.0  ;;  %v385_v47 = vmax.f32 %v381_v43, 0.0 }
 0x145   :  { %v394_v48 = vadd.f32 1e-05, %v386_v44  ;;  %v396_v49 = vadd.f32 1e-05, %v388_v45  ;;  %v387_v50 = vmul.f32 0.032258064, %v383_v46 }
 0x146   :  { %v389_v51 = vmul.f32 0.032258064, %v385_v47 }
 0x147   :  { %591 = vrsqrt.f32 %v394_v48  ;;  %v395_v52 = vadd.f32 1e-05, %v387_v50 }
 0x148   :  { %593 = vrsqrt.f32 %v396_v49  ;;  %v397_v53 = vadd.f32 1e-05, %v389_v51 }
 0x149   :  { %595 = vrsqrt.f32 %v395_v52 }
 0x14a   :  { %597 = vrsqrt.f32 %v397_v53 }
 0x151   :  { %v592_v60 = vpop.eup %591 }
 0x152   :  { %v594_v63 = vpop.eup %593  ;;  %v402_v2 = vmul.f32 %v592_v60, %v390_v59 }
 0x153   :  { %v596_v3 = vpop.eup %595  ;;  %v404_v58 = vmul.f32 %v594_v63, %v392_v61 }
 0x154   :  { %v598_v11 = vpop.eup %597  ;;  %v403_v5 = vmul.f32 %v596_v3, %v391_v1  ;;  %v413_v6 = vmul.f32 %v466_v62, %v402_v2 }
 0x155   :  { %v405_v13 = vmul.f32 %v598_v11, %v393_v4  ;;  %v415_v7 = vmul.f32 %v466_v62, %v404_v58 }
 0x156   :  { %v414_v8 = vmul.f32 %v466_v62, %v403_v5  ;;  %v424_v9 = vadd.f32 %v467_v0, %v413_v6 }
 0x157   :  { %v416_v10 = vmul.f32 %v466_v62, %v405_v13  ;;  %v426_v12 = vadd.f32 %v467_v0, %v415_v7 }
 0x158   :  { %v425_v14 = vadd.f32 %v467_v0, %v414_v8  ;;  %428 = vst [vmem:[#allocation7] sm:$0xff] %v424_v9 }
 0x159   :  { %v427_v16 = vadd.f32 %v467_v0, %v416_v10  ;;  %430 = vst [vmem:[#allocation7 + $0x10] sm:$0xff] %v426_v12 }
 0x15a   :  { %429 = vst [vmem:[#allocation7 + $0x8] sm:$0xff] %v425_v14 }
 0x15b   :  { %431 = vst [vmem:[#allocation7 + $0x18] sm:$0xff] %v427_v16 }
 0x15c   :  { %654 = shalt.err (!%p651_p6)
}
 0x15d   :  { %s655_s22 = scalar_lea.hbm %s889_s4, 512 }
 0x15e   :  { %p656_p7 = scmp.ne.s32.totalorder %s889_s4, %s655_s22  ;;  %p659_p8 = scmp.lt.u32.totalorder %s655_s22, %s889_s4 }
 0x160   :  { %p661_p9 = pnand %p659_p8, %p656_p7 }
 0x162   :  { %664 = shalt.err (!%p661_p9)
}
 0x163   :  { %443 = dma.vmem_to_hbm [thread:$0]  %s438_s19, 512, %s889_s4, [#allocation4], %s672_s25, %s672_s25, %s673_s26  }
 0x164   :  { %669 = dma.done.wait [#allocation4], 512  }
 0x165   :  { %670 = vsyncadd [#allocation4], 4294966784 }
 0x166   :  { %447 = vsyncpa [#allocation3], 1 }
 0x167   :  { %448 = vsyncpa [#allocation6], 1 }
 0x168   :  { %449 = vsyncpa [#allocation4], 1 }

</bundles_post_ra>
